<compile_context>
chip_gen: v7x
topology: tpu7x:2x2x1
jax: 0.10.0
libtpu: 0.0.40
codegen_flags: <defaults>
</compile_context>

<pallas_src>
import numpy as np
import jax
import jax.numpy as jnp
from jax import lax
from jax.experimental import pallas as pl
from jax.experimental.pallas import tpu as pltpu

IN_RAW = 203        # raw input width: 193 kept features + 10 champion columns
IN_FEAT = 193       # fc input width
HIDDEN = 128
OUT = 1

MAX_BLOCK_B = 2048  # max batch tile (rows)

CHAMPION_IDX = np.array([0, 12, 24, 36, 48, 101, 113, 125, 137, 149])

# Indices below refer to columns of the 193-wide (post champion-drop) array,
# exactly as in DNN.normalize.
KILL_IDX   = np.array([0, 11, 22, 33, 44, 96, 107, 118, 129, 140])
DEATH_IDX  = np.array([1, 12, 23, 34, 45, 97, 108, 119, 130, 141])
ASSIST_IDX = np.array([2, 13, 24, 35, 46, 98, 109, 120, 131, 142])
GOLD_IDX   = np.array([6, 17, 28, 39, 50, 102, 113, 124, 135, 146])
CS_IDX     = np.array([8, 19, 30, 41, 52, 104, 115, 126, 137, 148])
BARON_IDX  = np.array([3, 14, 25, 36, 47, 99, 110, 121, 132, 143])
ELDER_IDX  = np.array([4, 15, 26, 37, 48, 100, 111, 122, 133, 144])
DT_IDX     = np.array([5, 16, 27, 38, 49, 101, 112, 123, 134, 145])
LEVEL_IDX  = np.array([7, 18, 29, 40, 51, 103, 114, 125, 136, 147])
X_IDX      = np.array([9, 20, 31, 42, 53, 105, 116, 127, 138, 149])
Y_IDX      = np.array([10, 21, 32, 43, 54, 106, 117, 128, 139, 150])

# deterministic stand-in for metrics.json
METRICS = {
    "kills":      {"mean": 5.0,    "std": 4.0},
    "deaths":     {"mean": 4.0,    "std": 3.0},
    "assists":    {"mean": 7.0,    "std": 5.0},
    "gold":       {"mean": 8000.0, "std": 4000.0},
    "creepscore": {"mean": 150.0,  "std": 90.0},
}


def build_norm_vectors():
    """Fold the `normalize` method into per-column scale/shift over 193 cols.

    All index sets (and the final column 192) are pairwise disjoint, so the
    sequential in-place updates of the PyTorch code reduce exactly to one
    per-column affine transform (verified: each set is {a + 11k} with a unique
    offset a in 0..10 / 96..106).
    """
    scale = np.ones(IN_FEAT, dtype=np.float32)
    shift = np.zeros(IN_FEAT, dtype=np.float32)

    def mean_std(idx, m, s):
        scale[idx] = 1.0 / s
        shift[idx] = -m / s

    def div(idx, c):
        scale[idx] = 1.0 / c

    mean_std(KILL_IDX,   METRICS["kills"]["mean"],      METRICS["kills"]["std"])
    mean_std(DEATH_IDX,  METRICS["deaths"]["mean"],     METRICS["deaths"]["std"])
    mean_std(ASSIST_IDX, METRICS["assists"]["mean"],    METRICS["assists"]["std"])
    mean_std(GOLD_IDX,   METRICS["gold"]["mean"],       METRICS["gold"]["std"])
    mean_std(CS_IDX,     METRICS["creepscore"]["mean"], METRICS["creepscore"]["std"])
    div(BARON_IDX, 3 * 60)
    div(ELDER_IDX, 2 * 60 + 30)
    div(DT_IDX, 79)
    div(LEVEL_IDX, 18)
    div(X_IDX, 14500)
    div(Y_IDX, 14500)
    scale[-1] = 1.0 / 30.0          # x[:, -1] /= 30
    return scale, shift


def init_params(key):
    """Deterministic parameter init (shapes from the module's __init__)."""
    k1, k2, k3, k4 = jax.random.split(key, 4)
    # torch Linear: weight (out,in); store transposed as (in,out)
    w1 = jax.random.normal(k1, (IN_FEAT, HIDDEN), jnp.float32) * 0.05
    b1 = jax.random.normal(k2, (HIDDEN,), jnp.float32) * 0.05
    w2 = jax.random.normal(k3, (HIDDEN, OUT), jnp.float32) * 0.05
    b2 = jax.random.normal(k4, (OUT,), jnp.float32) * 0.05
    return w1, b1, w2, b2


def prepare_params(params):
    """Fold column-drop + normalization into W1/b1; build kernel operands once."""
    w1, b1, w2, b2 = params
    scale_np, shift_np = build_norm_vectors()
    scale = jnp.asarray(scale_np)
    shift = jnp.asarray(shift_np)
    keep = np.delete(np.arange(IN_RAW), CHAMPION_IDX)   # raw ids of the 193 kept cols

    # normalization folded into the first Linear (index sets are disjoint)
    w1_fold = w1 * scale[:, None]                        # (193,128)
    b1_fold = b1 + shift @ w1                            # (128,)

    # champion-column drop folded in: place rows at their raw positions among
    # the 203 raw columns; champion rows stay exactly zero so those raw values
    # never contribute.
    w1_raw = jnp.zeros((IN_RAW, HIDDEN), jnp.float32).at[keep, :].set(w1_fold)

    w1_p = w1_raw.astype(jnp.bfloat16)                   # resident bf16 weight
    b1_p = b1_fold.reshape(1, HIDDEN).astype(jnp.float32)
    w2_row = w2.reshape(1, HIDDEN).astype(jnp.float32)   # (128,1) -> (1,128)
    b2_s = b2.reshape(1).astype(jnp.float32)             # scalar bias -> SMEM
    return w1_p, b1_p, w2_row, b2_s


def dnn_kernel(x_ref, w1_ref, b1_ref, w2_ref, b2_ref, o_ref):
    # raw (bb, 203) tile; column drop + normalization + Linear(193,128) are all
    # folded into the single bf16 matmul against W1' (f32 accumulation on MXU)
    x = x_ref[...].astype(jnp.bfloat16)                                  # (bb, 203)
    h = jnp.dot(x, w1_ref[...], preferred_element_type=jnp.float32) + b1_ref[...]
    h = jnp.maximum(h, 0.0)                                              # (bb, 128)
    # Linear(128,1) as a tiny matvec with BATCH ON THE LANE AXIS:
    # (1,128) . (bb,128)^T -> (1, bb); output stays lane-dense.
    s = lax.dot_general(w2_ref[...], h,
                        dimension_numbers=(((1,), (1,)), ((), ())),
                        preferred_element_type=jnp.float32)              # (1, bb)
    o_ref[...] = jnp.broadcast_to(s + b2_ref[0], o_ref.shape)            # (8, bb)


def _round_up(n, m):
    return ((n + m - 1) // m) * m


def _choose_block_b(B):
    """Batch tile: big (amortize ~0.35us/step overhead), lane-aligned, and for
    large batches capped so the grid has >=2 steps (both v7x TensorCores)."""
    if B <= 256:
        return B                                   # single full-array block
    return min(MAX_BLOCK_B, _round_up((B + 1) // 2, 256))


def _dnn_forward(x_raw, w1_p, b1_p, w2_row, b2_s):
    """x_raw: (B, 203) raw features. Returns (B, 1) float32."""
    B = x_raw.shape[0]
    x_raw = x_raw.astype(jnp.float32)              # no-op if already f32
    bb = _choose_block_b(B)

    out = pl.pallas_call(
        dnn_kernel,
        out_shape=jax.ShapeDtypeStruct((8, B), jnp.float32),
        grid=(pl.cdiv(B, bb),),
        in_specs=[
            pl.BlockSpec((bb, IN_RAW), lambda i: (i, 0)),        # raw x tile (no pad)
            pl.BlockSpec((IN_RAW, HIDDEN), lambda i: (0, 0)),    # W1' (VMEM-resident)
            pl.BlockSpec((1, HIDDEN), lambda i: (0, 0)),         # b1'
            pl.BlockSpec((1, HIDDEN), lambda i: (0, 0)),         # W2 row
            pl.BlockSpec(memory_space=pltpu.MemorySpace.SMEM),   # b2 scalar
        ],
        out_specs=pl.BlockSpec((8, bb), lambda i: (0, i)),       # batch on lane axis
        compiler_params=pltpu.CompilerParams(
            dimension_semantics=("parallel",)),
    )(x_raw, w1_p, b1_p, w2_row, b2_s)

    # row 0 holds the result for every batch element; contiguous slice.
    return out[0, :, None]


dnn_forward = jax.jit(_dnn_forward)


def dnn_reference(x_raw, params):
    """Pure-JAX f32 reference mirroring the PyTorch forward."""
    w1, b1, w2, b2 = params
    scale, shift = build_norm_vectors()
    keep = np.delete(np.arange(IN_RAW), CHAMPION_IDX)
    x_nc = x_raw[:, keep].astype(jnp.float32)
    x_nc = x_nc * scale[None, :] + shift[None, :]
    h = jnp.maximum(x_nc @ w1 + b1, 0.0)
    return h @ w2 + b2


if __name__ == "__main__":
    key = jax.random.PRNGKey(0)
    k_param, k_x, k_x2 = jax.random.split(key, 3)

    params = init_params(k_param)
    prepared = prepare_params(params)          # folded params built ONCE

    # bf16 weights/activations vs an f32 reference: ~0.5-1% relative error.
    RTOL, ATOL = 2e-2, 0.3

    # small deterministic example: (batch=2, raw feature width=203)
    B = 2
    x_raw = jax.random.uniform(k_x, (B, IN_RAW), jnp.float32, minval=0.0, maxval=100.0)
    out = jax.block_until_ready(dnn_forward(x_raw, *prepared))
    ref = dnn_reference(x_raw, params)
    assert out.shape == (B, OUT)
    np.testing.assert_allclose(np.asarray(out), np.asarray(ref), rtol=RTOL, atol=ATOL)

    # larger batch exercises the multi-step (parallel) grid + ragged last block
    B2 = 320
    x_big = jax.random.uniform(k_x2, (B2, IN_RAW), jnp.float32, minval=0.0, maxval=100.0)
    out_big = jax.block_until_ready(dnn_forward(x_big, *prepared))
    ref_big = dnn_reference(x_big, params)
    assert out_big.shape == (B2, OUT)
    np.testing.assert_allclose(np.asarray(out_big), np.asarray(ref_big), rtol=RTOL, atol=ATOL)

    print("KERNEL_OK")
</pallas_src>

<mosaic_0001>
module attributes {stable_mosaic.version = 11 : i64} {
  func.func @dnn_kernel(%arg0: i32, %arg1: memref<2x203xf32, #tpu.memory_space<vmem>>, %arg2: memref<203x128xbf16, #tpu.memory_space<vmem>>, %arg3: memref<1x128xf32, #tpu.memory_space<vmem>>, %arg4: memref<1x128xf32, #tpu.memory_space<vmem>>, %arg5: memref<1xf32, #tpu.memory_space<smem>>, %arg6: memref<8x2xf32, #tpu.memory_space<vmem>>) attributes {dimension_semantics = [#tpu.dimension_semantics<parallel>], iteration_bounds = array<i64: 1>, scalar_prefetch = 0 : i64, scratch_operands = 0 : i64, tpu.core_type = #tpu.core_type<tc>, window_params = [{transform_indices = @transform_0, window_bounds = array<i64: 2, 203>}, {pipeline_mode = #tpu.pipeline_mode<synchronous>, transform_indices = @transform_1, window_bounds = array<i64: 203, 128>}, {pipeline_mode = #tpu.pipeline_mode<synchronous>, transform_indices = @transform_2, window_bounds = array<i64: 1, 128>}, {pipeline_mode = #tpu.pipeline_mode<synchronous>, transform_indices = @transform_3, window_bounds = array<i64: 1, 128>}, {transform_indices = @transform_4, window_bounds = array<i64: 1>}, {transform_indices = @transform_5, window_bounds = array<i64: 8, 2>}]} {
    %c0 = arith.constant 0 : index
    %c0_0 = arith.constant 0 : index
    %0 = vector.load %arg1[%c0, %c0_0] : memref<2x203xf32, #tpu.memory_space<vmem>>, vector<2x203xf32>
    %1 = arith.truncf %0 : vector<2x203xf32> to vector<2x203xbf16>
    %c0_1 = arith.constant 0 : index
    %c0_2 = arith.constant 0 : index
    %2 = vector.load %arg2[%c0_1, %c0_2] : memref<203x128xbf16, #tpu.memory_space<vmem>>, vector<203x128xbf16>
    %cst = arith.constant dense<0.000000e+00> : vector<2x128xf32>
    %3 = tpu.matmul %1, %2, %cst {dimension_numbers = #tpu.dot_dimension_numbers<[1], [0], [0], [1], [0, 0, 1, 1], [], []>} : vector<2x203xbf16>, vector<203x128xbf16>, vector<2x128xf32> -> vector<2x128xf32>
    %c0_3 = arith.constant 0 : index
    %c0_4 = arith.constant 0 : index
    %4 = vector.load %arg3[%c0_3, %c0_4] : memref<1x128xf32, #tpu.memory_space<vmem>>, vector<1x128xf32>
    %5 = vector.broadcast %4 : vector<1x128xf32> to vector<2x128xf32>
    %6 = arith.addf %3, %5 : vector<2x128xf32>
    %cst_5 = arith.constant 0.000000e+00 : f32
    %7 = vector.broadcast %cst_5 : f32 to vector<2x128xf32>
    %8 = arith.maximumf %6, %7 : vector<2x128xf32>
    %c0_6 = arith.constant 0 : index
    %c0_7 = arith.constant 0 : index
    %9 = vector.load %arg4[%c0_6, %c0_7] : memref<1x128xf32, #tpu.memory_space<vmem>>, vector<1x128xf32>
    %cst_8 = arith.constant dense<0.000000e+00> : vector<1x2xf32>
    %10 = tpu.matmul %9, %8, %cst_8 {dimension_numbers = #tpu.dot_dimension_numbers<[1], [1], [0], [0], [0, 0, 1, 0], [], []>} : vector<1x128xf32>, vector<2x128xf32>, vector<1x2xf32> -> vector<1x2xf32>
    %c0_9 = arith.constant 0 : index
    %11 = memref.load %arg5[%c0_9] : memref<1xf32, #tpu.memory_space<smem>>
    %12 = vector.broadcast %11 : f32 to vector<1x2xf32>
    %13 = arith.addf %10, %12 : vector<1x2xf32>
    %14 = vector.shape_cast %13 : vector<1x2xf32> to vector<1x2xf32>
    %15 = vector.broadcast %14 : vector<1x2xf32> to vector<8x2xf32>
    %c0_10 = arith.constant 0 : index
    %c0_11 = arith.constant 0 : index
    %16 = vector.load %arg6[%c0_10, %c0_11] : memref<8x2xf32, #tpu.memory_space<vmem>>, vector<8x2xf32>
    tpu.vector_store %arg6[%c0_10, %c0_11], %15 {strides = array<i32>} : memref<8x2xf32, #tpu.memory_space<vmem>>, vector<8x2xf32>,
    return
  }
  func.func @transform_0(%arg0: i32) -> (i32, i32) {
    %c0_i32 = arith.constant 0 : i32
    %c0_i32_0 = arith.constant 0 : i32
    return %arg0, %c0_i32 : i32, i32
  }
  func.func @transform_1(%arg0: i32) -> (i32, i32) {
    %c0_i32 = arith.constant 0 : i32
    %c0_i32_0 = arith.constant 0 : i32
    %c0_i32_1 = arith.constant 0 : i32
    return %c0_i32, %c0_i32_0 : i32, i32
  }
  func.func @transform_2(%arg0: i32) -> (i32, i32) {
    %c0_i32 = arith.constant 0 : i32
    %c0_i32_0 = arith.constant 0 : i32
    %c0_i32_1 = arith.constant 0 : i32
    return %c0_i32, %c0_i32_0 : i32, i32
  }
  func.func @transform_3(%arg0: i32) -> (i32, i32) {
    %c0_i32 = arith.constant 0 : i32
    %c0_i32_0 = arith.constant 0 : i32
    %c0_i32_1 = arith.constant 0 : i32
    return %c0_i32, %c0_i32_0 : i32, i32
  }
  func.func @transform_4(%arg0: i32) -> i32 {
    %c0_i32 = arith.constant 0 : i32
    %c0_i32_0 = arith.constant 0 : i32
    return %c0_i32 : i32
  }
  func.func @transform_5(%arg0: i32) -> (i32, i32) {
    %c0_i32 = arith.constant 0 : i32
    %c0_i32_0 = arith.constant 0 : i32
    return %c0_i32, %arg0 : i32, i32
  }
}

</mosaic_0001>

<bundles_post_ra>
// kernel: _dnn_forward.1
= control target key start
LH: loop header
LB: loop body
LE: loop exit
PB: predicated region body
PF: predicated region fallthrough
CT: control target
= control target key end

     0   :  { %11 = vsyncpa [#allocation4], 0  ;;  %s482_s0 = inlined_call_operand.hbm [shape: f32[2,203], index: 0, kind: input, shape index: {}]   ;;  %s483_s1 = inlined_call_operand.hbm [shape: bf16[203,128], index: 1, kind: input, shape index: {}]   ;;  %s484_s2 = inlined_call_operand.vmem [shape: f32[1,128], index: 2, kind: input, shape index: {}]   ;;  %s485_s3 = inlined_call_operand.vmem [shape: f32[1,128], index: 3, kind: input, shape index: {}]   ;;  %s486_s4 = inlined_call_operand.<no memory space> [shape: f32[1], index: 4, kind: input, shape index: {}]   ;;  %s487_s5 = inlined_call_operand.vmem [shape: f32[8,2], index: 5, kind: output, shape index: {}]  }
   0x1   :  { %12 = vsyncpa [#allocation6], 0  ;;  %s401_s18 = smov [#allocation3]   ;;  %s402_s20 = smov [#allocation5]  }
   0x2   :  { %s19_s19 = sshll.u32 %s401_s18, 4  ;;  %s28_s21 = sshll.u32 %s402_s20, 4  ;;  %s20_s19 = int_to_ptr.vmem [resolvable:$true] %s19_s19  ;;  %s439_s21 = int_to_ptr.vmem [resolvable:$true] %s28_s21 }
   0x3   :  { %s353_s24 = scalar_lea.hbm %s482_s0, 64 }
   0x4   :  { %p354_p0 = scmp.ne.s32.totalorder %s482_s0, %s353_s24  ;;  %p357_p1 = scmp.lt.u32.totalorder %s353_s24, %s482_s0 }
   0x6   :  { %p359_p2 = pnand %p357_p1, %p354_p0 }
   0x8   :  { %362 = shalt.err (!%p359_p2)
}
   0x9   :  { %s363_s29 = scalar_lea.vmem %s20_s19, 64  ;;  %p368_p4 = scmp.lt.s32.totalorder %s20_s19, %s20_s19 }
   0xa   :  { %p364_p3 = scmp.ne.s32.totalorder %s20_s19, %s363_s29  ;;  %p369_p5 = scmp.lt.s32.totalorder %s363_s29, %s363_s29 }
   0xc   :  { %p370_p6 = por %p369_p5, %p368_p4 }
   0xe   :  { %p371_p7 = pnand %p370_p6, %p364_p3 }
  0x10   :  { %374 = shalt.err (!%p371_p7)
}
  0x11   :  { %22 = dma.hbm_to_vmem [thread:$0]  %s482_s0, 64, %s20_s19, [#allocation4]  }
  0x12   :  { %s375_s9 = scalar_lea.hbm %s483_s1, 1664 }
  0x13   :  { %p376_p8 = scmp.ne.s32.totalorder %s483_s1, %s375_s9  ;;  %p379_p9 = scmp.lt.u32.totalorder %s375_s9, %s483_s1 }
  0x15   :  { %p381_p10 = pnand %p379_p9, %p376_p8 }
  0x17   :  { %384 = shalt.err (!%p381_p10)
}
  0x18   :  { %s385_s14 = scalar_lea.vmem %s439_s21, 1664  ;;  %p390_p12 = scmp.lt.s32.totalorder %s439_s21, %s439_s21 }
  0x19   :  { %p386_p11 = scmp.ne.s32.totalorder %s439_s21, %s385_s14  ;;  %p391_p13 = scmp.lt.s32.totalorder %s385_s14, %s385_s14 }
  0x1b   :  { %p392_p0 = por %p391_p13, %p390_p12 }
  0x1d   :  { %p393_p1 = pnand %p392_p0, %p386_p11 }
  0x1f   :  { %396 = shalt.err (!%p393_p1)
}
  0x20   :  { %s403_s0 = smov 64   ;;  %s404_s15 = smov 4  }
  0x21   :  { %34 = dma.hbm_to_vmem [thread:$0]  %s483_s1, 1664, %s439_s21, [#allocation6], %s403_s0, %s403_s0, %s404_s15  }
  0x22   :  { %397 = dma.done.wait [#allocation4], 64  }
  0x23   :  { %398 = vsyncadd [#allocation4], 4294967232 }
  0x24   :  { %399 = dma.done.wait [#allocation6], 1664  }
  0x25   :  { %400 = vsyncadd [#allocation6], 4294965632  ;;  %v405_v0 = vmov 0   ;;  %v340_v1 = vld [vmem:[#allocation5] sm:$0xff]   ;;  %v341_v2 = vld [vmem:[#allocation5 + $0x8] sm:$0xff]   ;;  %vm172_vm0 = vcmask 613376   ;;  %v297_v31 = vlaneseq  ;;  %v226_v33 = vstv %s486_s4 }
  0x26   :  { %183 = vmatprep.subr.bf16.mxu0 %v405_v0  ;;  %v342_v3 = vld [vmem:[#allocation5 + $0x10] sm:$0xff]   ;;  %v343_v4 = vld [vmem:[#allocation5 + $0x18] sm:$0xff]   ;;  %v344_v6 = vld [vmem:[#allocation5 + $0x20] sm:$0xff]   ;;  %vm176_vm1 = vcmask 1044480   ;;  %vm177_vm2 = vcmask 1045504   ;;  %v406_v15 = vmov 65535  }
  0x27   :  { %184 = vmatpush1.bf16.msra.mxu0 %v340_v1  ;;  %v309_v5 = vld.sshfl [vmem:[#allocation3] sm:$0x33 pattern:$0x76325410]  ;;  %v345_v9 = vld [vmem:[#allocation5 + $0x28] sm:$0xff]   ;;  %v346_v10 = vld [vmem:[#allocation5 + $0x30] sm:$0xff]  }
  0x28   :  { %185 = vmatprep.subr.bf16.mxu0 %v405_v0  ;;  %v57_v7 = vcombine.high %v309_v5, %v309_v5  ;;  %v347_v11 = vld [vmem:[#allocation5 + $0x38] sm:$0xff]   ;;  %v348_v12 = vld [vmem:[#allocation5 + $0x40] sm:$0xff]   ;;  %v349_v13 = vld [vmem:[#allocation5 + $0x48] sm:$0xff]   ;;  %v178_v16 = vsel %vm176_vm1, 4294967295, %v406_v15  ;;  %v60_v21 = vpack.c.bf16 %v309_v5, %v309_v5  ;;  %v407_v22 = vmov 0.0  }
  0x29   :  { %v350_v14 = vld [vmem:[#allocation5 + $0x50] sm:$0xff]   ;;  %v351_v17 = vld [vmem:[#allocation5 + $0x58] sm:$0xff]   ;;  %v352_v18 = vld [vmem:[#allocation5 + $0x60] sm:$0x3f]   ;;  %v179_v19 = vsel %vm177_vm2, %v178_v16, 0  ;;  %327 = vmatprep.subr.mxu1 %v407_v22  ;;  %vm408_vm3 = vmmov 0  }
  0x2a   :  { %v61_v8 = vpack.c.bf16 %v57_v7, %v57_v7  ;;  %v181_v20 = vand.u32 %v352_v18, %v179_v19  ;;  %329 = vmatprep.mubr.msk.f32.mxu1 %vm408_vm3, %v407_v22  ;;  %v310_v23 = vld [vmem:[%s484_s2] ss:$0 sm:$0xff]  ;;  %v298_v32 = vshrl.u32 %v297_v31, 7  ;;  %vm301_vm4 = vcmask 15360  }
  0x2b   :  { %186 = vmatpush1.bf16.msra.mxu0 %v341_v2  ;;  %v224_v30 = vld [vmem:[%s485_s3] sm:$0x1] }
  0x2c   :  { %187 = vmatprep.subr.bf16.mxu0 %v405_v0  ;;  %324 = vmatprep.mubr.msk.bf16.mxu0 %vm172_vm0, %v61_v8  ;;  %v299_v34 = vsub.s32 0, %v298_v32 }
  0x2f   :  { %188 = vmatpush1.bf16.msra.mxu0 %v342_v3 }
  0x30   :  { %189 = vmatprep.subr.bf16.mxu0 %v405_v0 }
  0x33   :  { %190 = vmatpush1.bf16.msra.mxu0 %v343_v4 }
  0x34   :  { %191 = vmatprep.subr.bf16.mxu0 %v405_v0 }
  0x37   :  { %192 = vmatpush1.bf16.msra.mxu0 %v344_v6 }
  0x38   :  { %193 = vmatprep.subr.bf16.mxu0 %v405_v0 }
  0x3b   :  { %194 = vmatpush1.bf16.msra.mxu0 %v345_v9 }
  0x3c   :  { %195 = vmatprep.subr.bf16.mxu0 %v405_v0 }
  0x3f   :  { %196 = vmatpush1.bf16.msra.mxu0 %v346_v10 }
  0x40   :  { %197 = vmatprep.subr.bf16.mxu0 %v405_v0 }
  0x43   :  { %198 = vmatpush1.bf16.msra.mxu0 %v347_v11 }
  0x44   :  { %199 = vmatprep.subr.bf16.mxu0 %v405_v0 }
  0x47   :  { %200 = vmatpush1.bf16.msra.mxu0 %v348_v12 }
  0x48   :  { %201 = vmatprep.subr.bf16.mxu0 %v405_v0 }
  0x4b   :  { %202 = vmatpush1.bf16.msra.mxu0 %v349_v13 }
  0x4c   :  { %203 = vmatprep.subr.bf16.mxu0 %v405_v0 }
  0x4f   :  { %204 = vmatpush1.bf16.msra.mxu0 %v350_v14 }
  0x50   :  { %205 = vmatprep.subr.bf16.mxu0 %v405_v0 }
  0x53   :  { %206 = vmatpush1.bf16.msra.mxu0 %v351_v17 }
  0x54   :  { %207 = vmatprep.subr.bf16.mxu0 %v405_v0 }
  0x57   :  { %208 = vmatpush1.bf16.msra.mxu0 %v181_v20 }
  0x5a   :  { %216 = vmatmul.mubr.bf16.vlgmr.msra.gmra.mrb[0].mxu0 %v60_v21 }
 0x12d   :  { %v217_v24 = vpop.f32.mrb[0].mxu0 }
 0x12e   :  { %v218_v25 = vadd.f32 %v310_v23, %v217_v24  ;;  %v219_v26 = vpop.f32.mrb[1].mxu0 }
 0x12f   :  { %v220_v27 = vpop.f32.mrb[2].mxu0 }
 0x130   :  { %v223_v28 = vmax.f32 %v218_v25, 0.0  ;;  %v221_v29 = vpop.f32.mrb[3].mxu0 }
 0x132   :  { %328 = vmatpush3.xpose.msra.mxu1 %v223_v28 }
 0x135   :  { %330 = vmatmul.mubr.f32.vlgmr.msra.gmra.mrb[0].mxu1 %v224_v30 }
 0x208   :  { %v293_v35 = vpop.f32.mrb[0].mxu1 }
 0x209   :  { %v294_v36 = vadd.f32 %v293_v35, %v226_v33  ;;  %v331_v37 = vpop.f32.mrb[1].mxu1 }
 0x20b   :  { %v300_v38 = vrot.slane %v294_v36, %v299_v34 }
 0x20d   :  { %302 = vst.msk [vmem:[%s487_s5] sm:$0xff] %vm301_vm4, %v300_v38 }
 0x20e   :  { %307 = vsyncpa [#allocation4], 1 }
 0x20f   :  { %308 = vsyncpa [#allocation6], 1 }

</bundles_post_ra>
